<compile_context>
chip_gen: v7x
topology: tpu7x:2x2x1
jax: 0.10.0
libtpu: 0.0.40
codegen_flags: <defaults>
</compile_context>

<pallas_src>
import functools
import math

import jax
import jax.numpy as jnp
from jax.experimental import pallas as pl
from jax.experimental.pallas import tpu as pltpu

_TL_HARD_MAX = 8192               # absolute cap on the 1x1 spatial (lane) tile
_TL_TILE_BYTES = 4 * 1024 * 1024  # target per-buffer input-tile footprint
_VMEM_CAP = 64 * 1024 * 1024      # stay within v7x physical VMEM per TensorCore


def _round_up(x, m):
    return ((x + m - 1) // m) * m


def _choose_spatial_tile(hw, cin, bytes_per_elem):
    """Largest lane tile (multiple of 128) whose input slab fits the byte budget."""
    cap = max(128, (_TL_TILE_BYTES // max(1, cin * bytes_per_elem)) // 128 * 128)
    return int(min(cap, _TL_HARD_MAX, _round_up(hw, 128)))


# ---------------------------------------------------------------------------
# Pallas kernels
# ---------------------------------------------------------------------------
def _pw_conv_kernel(x_ref, w_ref, b_ref, o_ref):
    """1x1 conv tile: o[0] = W @ x[0] + b.  x:(1,Cin,TL) w:(Cout,Cin) b:(Cout,1)."""
    y = jnp.dot(w_ref[...], x_ref[0], preferred_element_type=jnp.float32)
    o_ref[0] = (y + b_ref[...]).astype(o_ref.dtype)


def _kxk_conv_kernel(x_ref, w_ref, b_ref, o_ref, *, K, Wp, L):
    """k x k 'same' conv on one padded image, flattened spatially (lane-dense).

    x:(1,Cin,Hp*Wp+K-1)  w:(K*K,Cout,Cin)  b:(Cout,1)  o:(1,Cout,H*Wp)
    Tap (dh,dw) of the conv is the lane window starting at dh*Wp + dw.
    """
    acc = jnp.zeros(o_ref.shape[1:], jnp.float32)
    for t in range(K * K):  # static unroll; accumulation stays in vregs/VMEM
        dh, dw = divmod(t, K)
        off = dh * Wp + dw
        acc = acc + jnp.dot(
            w_ref[t], x_ref[0, :, off:off + L], preferred_element_type=jnp.float32
        )
    o_ref[0] = (acc + b_ref[...]).astype(o_ref.dtype)


# ---------------------------------------------------------------------------
# pallas_call wrappers
# ---------------------------------------------------------------------------
def _conv1x1(x, w2d, b):
    N, Cin, H, W = x.shape
    Cout = w2d.shape[0]
    HW = H * W
    bpe = jnp.dtype(x.dtype).itemsize
    TL = _choose_spatial_tile(HW, Cin, bpe)
    HWp = _round_up(HW, TL)

    xf = x.reshape(N, Cin, HW)
    if HWp != HW:
        xf = jnp.pad(xf, ((0, 0), (0, 0), (0, HWp - HW)))
    b2 = b.reshape(Cout, 1)

    # double-buffered input + output tiles + resident weights/bias, with headroom
    need = 2 * (Cin * TL + Cout * TL) * bpe + (Cout * Cin + Cout) * 4
    vmem_limit = int(min(_VMEM_CAP, max(32 * 1024 * 1024, int(need * 1.5))))

    out = pl.pallas_call(
        _pw_conv_kernel,
        out_shape=jax.ShapeDtypeStruct((N, Cout, HWp), x.dtype),
        grid=(N, HWp // TL),
        in_specs=[
            pl.BlockSpec((1, Cin, TL), lambda n, t: (n, 0, t)),
            pl.BlockSpec((Cout, Cin), lambda n, t: (0, 0)),
            pl.BlockSpec((Cout, 1), lambda n, t: (0, 0)),
        ],
        out_specs=pl.BlockSpec((1, Cout, TL), lambda n, t: (n, 0, t)),
        compiler_params=pltpu.CompilerParams(
            dimension_semantics=("parallel", "parallel"),
            vmem_limit_bytes=vmem_limit,
        ),
        cost_estimate=pl.CostEstimate(
            flops=2 * N * HWp * Cin * Cout,
            transcendentals=0,
            bytes_accessed=bpe * (N * Cin * HWp + N * Cout * HWp)
            + 4 * (Cin * Cout + Cout),
        ),
    )(xf, w2d, b2)

    if HWp != HW:
        out = out[:, :, :HW]
    return out.reshape(N, Cout, H, W)


def _conv_kxk(x, w_taps, b, k):
    # TODO(synk): for very large feature maps, tile this path over row bands with a
    #             halo (manual DMA) instead of one full image per grid step.
    N, Cin, H, W = x.shape
    Cout = w_taps.shape[1]
    p = k // 2
    Hp, Wp = H + 2 * p, W + 2 * p
    Lout = H * Wp
    Lin = Hp * Wp + (k - 1)  # extra zero tail so every shifted window is in range
    bpe = jnp.dtype(x.dtype).itemsize

    xpad = jnp.pad(x, ((0, 0), (0, 0), (p, p), (p, p)))
    xf = jnp.pad(xpad.reshape(N, Cin, Hp * Wp), ((0, 0), (0, 0), (0, k - 1)))
    b2 = b.reshape(Cout, 1)

    # double-buffered input/output + resident weights + per-tap shifted-slice copies
    need = (2 * (Cin * Lin + Cout * Lout) * bpe
            + (k * k * Cout * Cin + Cout) * 4
            + 2 * Cin * Lout * bpe          # lane-shifted view materialization
            + Cout * Lout * 4)              # f32 accumulator
    vmem_limit = int(min(_VMEM_CAP, max(32 * 1024 * 1024, int(need * 1.25))))

    kern = functools.partial(_kxk_conv_kernel, K=k, Wp=Wp, L=Lout)
    out = pl.pallas_call(
        kern,
        out_shape=jax.ShapeDtypeStruct((N, Cout, Lout), x.dtype),
        grid=(N,),
        in_specs=[
            pl.BlockSpec((1, Cin, Lin), lambda n: (n, 0, 0)),
            pl.BlockSpec((k * k, Cout, Cin), lambda n: (0, 0, 0)),
            pl.BlockSpec((Cout, 1), lambda n: (0, 0)),
        ],
        out_specs=pl.BlockSpec((1, Cout, Lout), lambda n: (n, 0, 0)),
        compiler_params=pltpu.CompilerParams(
            dimension_semantics=("parallel",),
            vmem_limit_bytes=vmem_limit,
        ),
        cost_estimate=pl.CostEstimate(
            flops=2 * N * Lout * Cin * Cout * k * k,
            transcendentals=0,
            bytes_accessed=bpe * (N * Cin * Lin + N * Cout * Lout)
            + 4 * (k * k * Cout * Cin + Cout),
        ),
    )(xf, w_taps, b2)

    # un-flatten; drop the 2*pad garbage columns of each padded-width row
    return out.reshape(N, Cout, H, Wp)[:, :, :, :W]


# ---------------------------------------------------------------------------
# Module forward + deterministic parameter init
# ---------------------------------------------------------------------------
def patch_unembed_forward(x, params):
    """PatchUnEmbed.forward: x (N, embed_dim, H, W) -> (N, out_chans, H, W)."""
    k = params["k"]
    w = params["w"].astype(x.dtype)   # (Cout, Cin, k, k), PyTorch OIHW layout
    b = params["b"]                   # (Cout,)
    Cout, Cin = w.shape[0], w.shape[1]
    if k == 1:
        return _conv1x1(x, w.reshape(Cout, Cin), b)
    if k % 2 == 0:
        # TODO(synk): even kernel_size with padding=k//2 changes the output spatial
        #             size in PyTorch; not supported by this Pallas path.
        raise NotImplementedError("even kernel_size not supported")
    w_taps = jnp.transpose(w, (2, 3, 0, 1)).reshape(k * k, Cout, Cin)
    return _conv_kxk(x, w_taps, b, k)


def init_patch_unembed_params(key, embed_dim=96, out_chans=3, kernel_size=None):
    if kernel_size is None:
        kernel_size = 1
    k = int(kernel_size)
    kw, kb = jax.random.split(key)
    fan_in = embed_dim * k * k
    bound = 1.0 / math.sqrt(fan_in)
    w = jax.random.uniform(kw, (out_chans, embed_dim, k, k), jnp.float32, -bound, bound)
    b = jax.random.uniform(kb, (out_chans,), jnp.float32, -bound, bound)
    return {"k": k, "w": w, "b": b}


# ---------------------------------------------------------------------------
if __name__ == "__main__":
    key = jax.random.PRNGKey(0)
    kx, kp1, kp3 = jax.random.split(key, 3)

    N, embed_dim, out_chans, H, W = 2, 96, 3, 16, 16
    x = jax.random.normal(kx, (N, embed_dim, H, W), jnp.float32)

    # --- module defaults: kernel_size=None -> 1x1 conv ----------------------
    p1 = init_patch_unembed_params(kp1, embed_dim=embed_dim, out_chans=out_chans,
                                   kernel_size=None)
    out1 = jax.jit(lambda inp: patch_unembed_forward(inp, p1))(x)
    jax.block_until_ready(out1)
    assert out1.shape == (N, out_chans, H, W) and out1.dtype == jnp.float32

    ref1 = jax.lax.conv_general_dilated(
        x, p1["w"], window_strides=(1, 1), padding=((0, 0), (0, 0)),
        dimension_numbers=("NCHW", "OIHW", "NCHW"),
        precision=jax.lax.Precision.HIGHEST) + p1["b"].reshape(1, -1, 1, 1)
    assert jnp.allclose(out1, ref1, atol=2e-2, rtol=2e-2), \
        float(jnp.max(jnp.abs(out1 - ref1)))

    # --- explicit kernel_size=3 ('same' padding) -----------------------------
    p3 = init_patch_unembed_params(kp3, embed_dim=embed_dim, out_chans=out_chans,
                                   kernel_size=3)
    out3 = jax.jit(lambda inp: patch_unembed_forward(inp, p3))(x)
    jax.block_until_ready(out3)
    assert out3.shape == (N, out_chans, H, W)

    ref3 = jax.lax.conv_general_dilated(
        x, p3["w"], window_strides=(1, 1), padding=((1, 1), (1, 1)),
        dimension_numbers=("NCHW", "OIHW", "NCHW"),
        precision=jax.lax.Precision.HIGHEST) + p3["b"].reshape(1, -1, 1, 1)
    assert jnp.allclose(out3, ref3, atol=2e-2, rtol=2e-2), \
        float(jnp.max(jnp.abs(out3 - ref3)))

    assert bool(jnp.all(jnp.isfinite(out1))) and bool(jnp.all(jnp.isfinite(out3)))
    print("KERNEL_OK")
</pallas_src>

<mosaic_0001>
module attributes {stable_mosaic.version = 11 : i64} {
  func.func @_pw_conv_kernel(%arg0: i32, %arg1: i32, %arg2: memref<1x96x256xf32, #tpu.memory_space<vmem>>, %arg3: memref<3x96xf32, #tpu.memory_space<vmem>>, %arg4: memref<3x1xf32, #tpu.memory_space<vmem>>, %arg5: memref<1x3x256xf32, #tpu.memory_space<vmem>>) attributes {dimension_semantics = [#tpu.dimension_semantics<parallel>, #tpu.dimension_semantics<parallel>], iteration_bounds = array<i64: 2, 1>, scalar_prefetch = 0 : i64, scratch_operands = 0 : i64, tpu.core_type = #tpu.core_type<tc>, window_params = [{transform_indices = @transform_0, window_bounds = array<i64: 1, 96, 256>}, {pipeline_mode = #tpu.pipeline_mode<synchronous>, transform_indices = @transform_1, window_bounds = array<i64: 3, 96>}, {pipeline_mode = #tpu.pipeline_mode<synchronous>, transform_indices = @transform_2, window_bounds = array<i64: 3, 1>}, {transform_indices = @transform_3, window_bounds = array<i64: 1, 3, 256>}]} {
    %c0 = arith.constant 0 : index
    %c0_0 = arith.constant 0 : index
    %0 = vector.load %arg3[%c0, %c0_0] : memref<3x96xf32, #tpu.memory_space<vmem>>, vector<3x96xf32>
    %c0_1 = arith.constant 0 : index
    %c0_2 = arith.constant 0 : index
    %c0_3 = arith.constant 0 : index
    %1 = vector.load %arg2[%c0_1, %c0_2, %c0_3] : memref<1x96x256xf32, #tpu.memory_space<vmem>>, vector<1x96x256xf32>
    %2 = vector.shape_cast %1 : vector<1x96x256xf32> to vector<96x256xf32>
    %cst = arith.constant dense<0.000000e+00> : vector<3x256xf32>
    %3 = tpu.matmul %0, %2, %cst {dimension_numbers = #tpu.dot_dimension_numbers<[1], [0], [0], [1], [0, 0, 1, 1], [], []>} : vector<3x96xf32>, vector<96x256xf32>, vector<3x256xf32> -> vector<3x256xf32>
    %c0_4 = arith.constant 0 : index
    %c0_5 = arith.constant 0 : index
    %4 = vector.load %arg4[%c0_4, %c0_5] : memref<3x1xf32, #tpu.memory_space<vmem>>, vector<3x1xf32>
    %5 = vector.broadcast %4 : vector<3x1xf32> to vector<3x256xf32>
    %6 = arith.addf %3, %5 : vector<3x256xf32>
    %c0_6 = arith.constant 0 : index
    %c0_7 = arith.constant 0 : index
    %c0_8 = arith.constant 0 : index
    %7 = vector.load %arg5[%c0_6, %c0_7, %c0_8] : memref<1x3x256xf32, #tpu.memory_space<vmem>>, vector<1x3x256xf32>
    %8 = vector.shape_cast %7 : vector<1x3x256xf32> to vector<3x256xf32>
    %9 = vector.shape_cast %6 : vector<3x256xf32> to vector<1x3x256xf32>
    tpu.vector_store %arg5[%c0_6, %c0_7, %c0_8], %9 {strides = array<i32>} : memref<1x3x256xf32, #tpu.memory_space<vmem>>, vector<1x3x256xf32>,
    return
  }
  func.func @transform_0(%arg0: i32, %arg1: i32) -> (i32, i32, i32) {
    %c0_i32 = arith.constant 0 : i32
    %c0_i32_0 = arith.constant 0 : i32
    return %arg0, %c0_i32, %arg1 : i32, i32, i32
  }
  func.func @transform_1(%arg0: i32, %arg1: i32) -> (i32, i32) {
    %c0_i32 = arith.constant 0 : i32
    %c0_i32_0 = arith.constant 0 : i32
    %c0_i32_1 = arith.constant 0 : i32
    return %c0_i32, %c0_i32_0 : i32, i32
  }
  func.func @transform_2(%arg0: i32, %arg1: i32) -> (i32, i32) {
    %c0_i32 = arith.constant 0 : i32
    %c0_i32_0 = arith.constant 0 : i32
    %c0_i32_1 = arith.constant 0 : i32
    return %c0_i32, %c0_i32_0 : i32, i32
  }
  func.func @transform_3(%arg0: i32, %arg1: i32) -> (i32, i32, i32) {
    %c0_i32 = arith.constant 0 : i32
    %c0_i32_0 = arith.constant 0 : i32
    return %arg0, %c0_i32, %arg1 : i32, i32, i32
  }
}

</mosaic_0001>

<bundles_post_ra>
// kernel: _lambda_.1
= control target key start
LH: loop header
LB: loop body
LE: loop exit
PB: predicated region body
PF: predicated region fallthrough
CT: control target
= control target key end

     0   :  { %s518_s12 = smov 0   ;;  %s520_s13 = smov 0   ;;  %s587_s0 = inlined_call_operand.vmem [shape: f32[2,96,256], index: 0, kind: input, shape index: {}]   ;;  %s588_s1 = inlined_call_operand.vmem [shape: f32[3,96], index: 1, kind: input, shape index: {}]   ;;  %s589_s2 = inlined_call_operand.vmem [shape: f32[3,1], index: 2, kind: input, shape index: {}]   ;;  %s590_s3 = inlined_call_operand.vmem [shape: f32[2,3,256], index: 3, kind: output, shape index: {}]  }
   0x1   :  { %s522_s14 = smov 0  }
   0x2 LB: > { %s25_s15 = sadd.s32 1, %s490_s13  ;;  %p412_p0 = scmp.ge.s32.totalorder %s494_s14, 1  ;;  %s494_s14 = sphi %s522_s14, %s13_s14   ;;  %s490_s13 = sphi %s520_s13, %s592_s13   ;;  %s486_s12 = sphi %s518_s12, %s591_s12  }
   0x3   : > { %p27_p1 = scmp.ge.s32.totalorder %s25_s15, 2  ;;  %p158_p2 = scmp.lt.s32.totalorder %s494_s14, 3 }
   0x5   : > { %s594_s15 = smov (%p27_p1, %s25_s15), 0  ;;  %p159_p3 = pnand %p412_p0, %p158_p2 }
   0x6   : > { %p191_p4 = scmp.lt.s32.totalorder (!%p159_p3), %s486_s12, 1  ;;  %v496_v0 = vmov (!%p159_p3), 0.0   ;;  %v497_v1 = vmov (!%p159_p3), 0   ;;  %v235_v2 = vld [vmem:[%s589_s2] sm:$0x7] (!%p159_p3)  ;;  %vm241_vm0 = vcmask (!%p159_p3), 785408  }
   0x7   : > { %162 = sbr.rel (%p159_p3) target bundleno = 263 (0x107), region = 32  ;;  %309 = vmatprep.mubr.f32.mxu0 (!%p159_p3), %v496_v0  ;;  %471 = vset.pattern.permute.xlu0 (!%p159_p3), %v497_v1  ;;  %v210_v39 = vld [vmem:[%s588_s1] sm:$0x7] (!%p159_p3) }
   0x8   : > { %238 = vperm.xlu0 (!%p159_p3), %471, %v235_v2  }
   0xe   : > { %s596_s12 = smov (!%p191_p4, %s486_s12), 1 }
   0xf   : > { %s444_s18 = smul.u32 192, %s596_s12  ;;  %s419_s24 = sshll.u32 %s596_s12, 3 }
  0x10   : > { %s208_s27 = scalar_lea.vmem %s590_s3, %s419_s24 }
  0x11   : > { %s545_s21 = scalar_lea.vmem %s587_s0, %s444_s18 }
  0x12   : > { %v212_v3 = vld [vmem:[%s545_s21 + $0x8] sm:$0xff]  ;;  %v214_v4 = vld [vmem:[%s545_s21 + $0x18] sm:$0xff]  ;;  %v211_v5 = vld [vmem:[%s545_s21] sm:$0xff] }
  0x13   : > { %v420_v6 = vpack.c.bf16 %v214_v4, %v212_v3  ;;  %v213_v7 = vld [vmem:[%s545_s21 + $0x10] sm:$0xff]  ;;  %v216_v8 = vld [vmem:[%s545_s21 + $0x28] sm:$0xff]  ;;  %v218_v9 = vld [vmem:[%s545_s21 + $0x38] sm:$0xff] }
  0x14   : > { %v422_v10 = vpack.c.bf16 %v213_v7, %v211_v5  ;;  %v424_v11 = vpack.c.bf16 %v218_v9, %v216_v8  ;;  %v215_v12 = vld [vmem:[%s545_s21 + $0x20] sm:$0xff]  ;;  %v217_v13 = vld [vmem:[%s545_s21 + $0x30] sm:$0xff]  ;;  %v220_v14 = vld [vmem:[%s545_s21 + $0x48] sm:$0xff] }
  0x15   : > { %421 = vmatprep.subr.bf16.mxu0 %v420_v6  ;;  %v222_v15 = vld [vmem:[%s545_s21 + $0x58] sm:$0xff]  ;;  %v426_v16 = vpack.c.bf16 %v217_v13, %v215_v12  ;;  %v219_v18 = vld [vmem:[%s545_s21 + $0x40] sm:$0xff]  ;;  %v221_v19 = vld [vmem:[%s545_s21 + $0x50] sm:$0xff] }
  0x16   : > { %423 = vmatpush1.bf16.msra.mxu0 %v422_v10  ;;  %v428_v17 = vpack.c.bf16 %v222_v15, %v220_v14  ;;  %v224_v20 = vld [vmem:[%s545_s21 + $0x68] sm:$0xff]  ;;  %v226_v21 = vld [vmem:[%s545_s21 + $0x78] sm:$0xff]  ;;  %v430_v22 = vpack.c.bf16 %v221_v19, %v219_v18  ;;  %v223_v24 = vld [vmem:[%s545_s21 + $0x60] sm:$0xff] }
  0x17   : > { %425 = vmatprep.subr.bf16.mxu0 %v424_v11  ;;  %v432_v23 = vpack.c.bf16 %v226_v21, %v224_v20  ;;  %v225_v25 = vld [vmem:[%s545_s21 + $0x70] sm:$0xff]  ;;  %v228_v26 = vld [vmem:[%s545_s21 + $0x88] sm:$0xff]  ;;  %v230_v27 = vld [vmem:[%s545_s21 + $0x98] sm:$0xff] }
  0x18   : > { %v434_v28 = vpack.c.bf16 %v225_v25, %v223_v24  ;;  %v436_v29 = vpack.c.bf16 %v230_v27, %v228_v26  ;;  %v227_v30 = vld [vmem:[%s545_s21 + $0x80] sm:$0xff]  ;;  %v229_v31 = vld [vmem:[%s545_s21 + $0x90] sm:$0xff]  ;;  %v232_v32 = vld [vmem:[%s545_s21 + $0xa8] sm:$0xff] }
  0x19   : > { %v234_v33 = vld [vmem:[%s545_s21 + $0xb8] sm:$0xff]  ;;  %v438_v34 = vpack.c.bf16 %v229_v31, %v227_v30  ;;  %v231_v36 = vld [vmem:[%s545_s21 + $0xa0] sm:$0xff]  ;;  %v233_v37 = vld [vmem:[%s545_s21 + $0xb0] sm:$0xff] }
  0x1a   : > { %427 = vmatpush1.bf16.msra.mxu0 %v426_v16  ;;  %v440_v35 = vpack.c.bf16 %v234_v33, %v232_v32  ;;  %v442_v38 = vpack.c.bf16 %v233_v37, %v231_v36 }
  0x1b   : > { %429 = vmatprep.subr.bf16.mxu0 %v428_v17 }
  0x1e   : > { %431 = vmatpush1.bf16.msra.mxu0 %v430_v22 }
  0x1f   : > { %433 = vmatprep.subr.bf16.mxu0 %v432_v23 }
  0x22   : > { %435 = vmatpush1.bf16.msra.mxu0 %v434_v28 }
  0x23   : > { %437 = vmatprep.subr.bf16.mxu0 %v436_v29 }
  0x26   : > { %439 = vmatpush1.bf16.msra.mxu0 %v438_v34 }
  0x27   : > { %441 = vmatprep.subr.bf16.mxu0 %v440_v35 }
  0x2a   : > { %443 = vmatpush1.bf16.msra.mxu0 %v442_v38 }
  0x2d   : > { %416 = vmatmul.mubr.msk.f32.vlgmr.msra.gmra.mrb[0].mxu0 %vm241_vm0, %v210_v39 }
  0x87   : > { %v239_v40 = vpop.permute.xlu0 %238 }
 0x100   : > { %v311_v41 = vpop.f32.mrb[0].mxu0 }
 0x101   : > { %v312_v42 = vadd.f32 %v311_v41, %v239_v40  ;;  %v313_v43 = vpop.f32.mrb[1].mxu0 }
 0x102   : > { %v314_v44 = vadd.f32 %v313_v43, %v239_v40 }
 0x104   : > { %v318_v45 = vcombine.low %v312_v42, %v314_v44 }
 0x106   : > { %320 = vst [vmem:[%s208_s27] sm:$0x77] %v318_v45 }
 0x107 PF: > { %s13_s14 = sadd.s32 1, %s494_s14   ;;  %s591_s12 = smov %s490_s13 }
 0x108   : > { %p10_p5 = scmp.ge.s32.totalorder %s13_s14, 4   ;;  %s592_s13 = smov %s594_s15 }
 0x10a   :  { %12 = sbr.rel (!%p10_p5) target bundleno = 2 (0x2), region = 62 }

</bundles_post_ra>
